<compile_context>
chip_gen: v7x
topology: tpu7x:2x2x1
jax: 0.10.0
libtpu: 0.0.40
codegen_flags: <defaults>
</compile_context>

<pallas_src>
import functools

import numpy as np
import jax
import jax.numpy as jnp
from jax.experimental import pallas as pl
from jax.experimental.pallas import tpu as pltpu

_HALO = 16   # halo rows fetched from the next tile; requires ceil(kW/stride)-1 <= _HALO
_LANE = 128  # TPU lane width


def _round_up(x, m):
    return ((x + m - 1) // m) * m


def _cdiv(a, b):
    return -(-a // b)


# ---------------------------------------------------------------------------
# Kernel 1: one-shot LoRA weight adaptation   W = W_frozen + alpha * (U @ V)
# ---------------------------------------------------------------------------
def _lora_weight_kernel(wf_ref, u_ref, v_ref, w_ref, *, alpha):
    delta = jnp.dot(u_ref[...], v_ref[...], preferred_element_type=jnp.float32)
    w_ref[...] = wf_ref[...] + alpha * delta


# ---------------------------------------------------------------------------
# Kernel 2: polyphase transposed conv, one time tile per grid step.
#   y[b, t, p*C_out + co] = bias[co]
#       + sum_s sum_ci x_pad[b, t + s, ci] * W_cat[s*C_in + ci, p*C_out + co]
# realised as a single im2col MXU matmul with K = n_taps*C_in.
# ---------------------------------------------------------------------------
def _convT_im2col_kernel(x_ref, halo_ref, w_ref, b_ref, y_ref, xim_ref, *, n_taps):
    B, T, c_in = x_ref.shape
    Np = y_ref.shape[-1]

    # Build the im2col layout  xim[b, t, s*C_in + ci] = x_cat[b, t + s, ci]
    # (x_cat = [tile ; halo] along time); each shifted window lands in its own lane block.
    for s in range(n_taps):
        lo = s * c_in
        if s == 0:
            xim_ref[:, :, lo:lo + c_in] = x_ref[...]
        else:
            xim_ref[:, :T - s, lo:lo + c_in] = x_ref[:, s:, :]
            xim_ref[:, T - s:, lo:lo + c_in] = halo_ref[:, :s, :]

    # Single MXU matmul (bf16 operands, f32 accumulation), bias folded in.
    xi = xim_ref[...].reshape(B * T, n_taps * c_in)
    acc = jnp.dot(xi, w_ref[...], preferred_element_type=jnp.float32) + b_ref[...]
    y_ref[...] = acc.reshape(B, T, Np).astype(y_ref.dtype)


# ---------------------------------------------------------------------------
# VMEM planning
# ---------------------------------------------------------------------------
def _vmem_plan():
    """(per-call block budget, vmem_limit_bytes, time-tile cap), per TPU generation."""
    try:
        cap = int(pltpu.get_tpu_info().vmem_capacity_bytes)
    except Exception:
        cap = 64 * 1024 * 1024              # assume the most constrained (v7x: 64 MiB/TC)
    if cap >= 100 * 1024 * 1024:            # v5e / v6e: 128 MiB VMEM -> actually use it
        return 56 * 1024 * 1024, 96 * 1024 * 1024, 1024
    return 26 * 1024 * 1024, 48 * 1024 * 1024, 512   # v7x: 64 MiB per TensorCore


def _pick_time_tile(t_rows, B, c_in, n_pad, n_taps, in_isz, budget_bytes, t_cap):
    """Largest multiple-of-16 time tile whose pipelined VMEM footprint fits the budget."""
    t = max(_HALO, min(_round_up(t_cap, _HALO), _round_up(t_rows, _HALO)))
    while t > _HALO:
        need = (2 * B * t * c_in * in_isz              # double-buffered input tile
                + 2 * B * _HALO * c_in * in_isz        # double-buffered halo block
                + B * t * n_taps * c_in * in_isz       # im2col VMEM scratch
                + 2 * B * t * n_pad * 4                # double-buffered f32 output tile
                + B * t * n_pad * 4                    # live f32 accumulator
                + B * t * c_in * in_isz                # slice-relayout temporaries
                + n_taps * c_in * n_pad * in_isz       # K-concatenated weights
                + n_pad * 4)                           # bias
        if need <= budget_bytes:
            break
        t -= _HALO
    return t


# ---------------------------------------------------------------------------
# Wrapper
# ---------------------------------------------------------------------------
def lora_conv_transpose1d(x, w_frozen, bias, U, V, *, alpha=1.0, stride=1,
                          padding=0, output_padding=0, compute_dtype=jnp.bfloat16):
    """x: [B, C_in, L] (PyTorch NCL).  Returns [B, C_out, L_out] in float32."""
    B, C_in, L = x.shape
    _, C_out, kW = w_frozen.shape
    L_out = (L - 1) * stride - 2 * padding + (kW - 1) + output_padding + 1
    assert L_out > 0

    n_taps = _cdiv(kW, stride)                  # taps per output phase (polyphase width)
    assert n_taps - 1 <= _HALO, "kernel_size/stride ratio exceeds halo capacity"
    N = stride * C_out                          # output lanes per base row
    N_pad = _round_up(N, _LANE)                 # lane-dense output width (no masked vst)
    K = n_taps * C_in                           # im2col contraction dim

    # ---- LoRA weight adaptation: one tiny pallas_call, hoisted off the time loop ----
    # NOTE: the adapted weight is kept f32 here and only cast to bf16 once, right before
    # the MXU matmul (bf16 rounding of W_frozen + alpha*delta is covered by the test tol).
    wf_flat = w_frozen.reshape(C_in, C_out * kW).astype(jnp.float32)
    w_adapted = pl.pallas_call(
        functools.partial(_lora_weight_kernel, alpha=float(alpha)),
        out_shape=jax.ShapeDtypeStruct((C_in, C_out * kW), jnp.float32),
    )(wf_flat, U.astype(jnp.float32), V.astype(jnp.float32))

    # Phase-major per-tap weights, concatenated along K (tiny, wrapper-side plumbing):
    #   W_cat[s*C_in + ci, p*C_out + co] = W_adapted[ci, co, p + (n_taps-1-s)*stride]
    kz = n_taps * stride
    Wz = jnp.pad(w_adapted.reshape(C_in, C_out, kW), ((0, 0), (0, 0), (0, kz - kW)))
    W_phase = (Wz.reshape(C_in, C_out, n_taps, stride)
                 .transpose(2, 0, 3, 1)
                 .reshape(n_taps, C_in, N))
    W_cat = W_phase[::-1].reshape(K, N)
    W_cat = jnp.pad(W_cat, ((0, 0), (0, N_pad - N))).astype(compute_dtype)
    bias_phase = jnp.tile(bias.reshape(1, C_out).astype(jnp.float32), (1, stride))
    bias_phase = jnp.pad(bias_phase, ((0, 0), (0, N_pad - N)))

    # ---- time tiling (base-resolution rows; each row yields `stride` output samples) --
    T_rows = _cdiv(padding + L_out, stride)
    in_isz = jnp.dtype(compute_dtype).itemsize
    budget, vmem_limit, t_cap = _vmem_plan()
    T_TILE = _pick_time_tile(T_rows, B, C_in, N_pad, n_taps, in_isz, budget, t_cap)
    assert T_TILE % _HALO == 0, "halo index_map requires T_TILE % _HALO == 0"
    n_tiles = _cdiv(T_rows, T_TILE)
    Tp = n_tiles * T_TILE + _HALO               # padded input length (incl. last halo)
    halo_blocks = T_TILE // _HALO

    # ---- input: [B, L, C_in], left-pad n_taps-1 zeros, pad/crop to Tp, bf16 cast ----
    x_t = jnp.transpose(x, (0, 2, 1))
    pad_l = n_taps - 1
    pad_r = max(0, Tp - L - pad_l)
    x_pad = jnp.pad(x_t, ((0, 0), (pad_l, pad_r), (0, 0)))[:, :Tp, :].astype(compute_dtype)

    flops = 2 * B * n_tiles * T_TILE * K * N_pad
    bytes_accessed = (B * Tp * C_in * in_isz + K * N_pad * in_isz
                      + B * n_tiles * T_TILE * N_pad * 4 + N_pad * 4)

    kernel = functools.partial(_convT_im2col_kernel, n_taps=n_taps)

    def build(dim_sem):
        # TODO(synk): on a profiled v5e with exposed DMA, add pipeline_mode=pl.Buffered(3)
        # to the two input BlockSpecs (its 128 MiB VMEM easily covers a 3rd buffer).
        return pl.pallas_call(
            kernel,
            out_shape=jax.ShapeDtypeStruct((B, n_tiles * T_TILE, N_pad), jnp.float32),
            grid=(n_tiles,),
            in_specs=[
                # main tile (non-overlapping)
                pl.BlockSpec((B, T_TILE, C_in), lambda i: (0, i, 0)),
                # 16-row halo = first rows of the *next* tile (same array passed twice)
                pl.BlockSpec((B, _HALO, C_in), lambda i: (0, (i + 1) * halo_blocks, 0)),
                # K-concatenated per-phase weights
                pl.BlockSpec((K, N_pad), lambda i: (0, 0)),
                pl.BlockSpec((1, N_pad), lambda i: (0, 0)),
            ],
            out_specs=pl.BlockSpec((B, T_TILE, N_pad), lambda i: (0, i, 0)),
            scratch_shapes=[pltpu.VMEM((B, T_TILE, K), compute_dtype)],
            compiler_params=pltpu.CompilerParams(
                dimension_semantics=(dim_sem,),
                vmem_limit_bytes=vmem_limit),
            cost_estimate=pl.CostEstimate(flops=int(flops), transcendentals=0,
                                          bytes_accessed=int(bytes_accessed)),
        )

    args = (x_pad, x_pad, W_cat, bias_phase)
    if n_tiles >= 2:
        # v7x has 2 TensorCores per chip: shard the independent time tiles across them.
        # CORE_PARALLEL is the only semantics that changes codegen; fall back safely.
        try:
            y_pad = jax.block_until_ready(build(pltpu.CORE_PARALLEL)(*args))
        except Exception:
            y_pad = build("parallel")(*args)
    else:
        y_pad = build("parallel")(*args)

    # ---- drop lane padding, un-interleave phases, crop to the requested window ----
    y = y_pad[:, :, :N].reshape(B, n_tiles * T_TILE * stride, C_out)
    y = y[:, padding:padding + L_out, :]
    return jnp.transpose(y, (0, 2, 1))                 # back to [B, C_out, L_out]


# ---------------------------------------------------------------------------
# Reference & test
# ---------------------------------------------------------------------------
def _reference_forward(x, w_frozen, bias, U, V, alpha, stride, padding, output_padding):
    """Brute-force f64 reference of conv_transpose1d with the LoRA-adapted weight."""
    x = np.asarray(x, np.float64)
    w = (np.asarray(w_frozen, np.float64)
         + alpha * (np.asarray(U, np.float64) @ np.asarray(V, np.float64)).reshape(w_frozen.shape))
    B, C_in, L = x.shape
    _, C_out, kW = w.shape
    L_out = (L - 1) * stride - 2 * padding + (kW - 1) + output_padding + 1
    L_full = (L - 1) * stride + kW
    L_span = max(L_full, padding + L_out)
    y_full = np.zeros((B, C_out, L_span), np.float64)
    for b in range(B):
        for ci in range(C_in):
            for t in range(L):
                for co in range(C_out):
                    for k in range(kW):
                        y_full[b, co, t * stride + k] += x[b, ci, t] * w[ci, co, k]
    y = y_full[:, :, padding:padding + L_out] + np.asarray(bias, np.float64)[None, :, None]
    return y


if __name__ == "__main__":
    # Small shapes consistent with a LoRA-wrapped ConvTranspose1d upsampling layer.
    B, C_in, C_out, L = 2, 8, 8, 16
    kW, stride, padding, output_padding = 4, 2, 1, 0
    rank, alpha = 4, 1.0
    # dropout = 0.0 -> dropout_layer is Identity (module default inference path)
    # TODO(synk): the surrounding HEncLayer stages (GroupNorm/GELU/DConv/GLU) are outside
    # this kernel; it covers the LoRA-adapted convolution the perf review targeted.

    key = jax.random.PRNGKey(0)
    k_x, k_w, k_b, k_u, k_v = jax.random.split(key, 5)

    x = jax.random.normal(k_x, (B, C_in, L), jnp.float32)
    w_frozen = jax.random.normal(k_w, (C_in, C_out, kW), jnp.float32) * 0.1
    bias = jax.random.normal(k_b, (C_out,), jnp.float32) * 0.1

    fan_in = C_out * kW  # per LoRAConvTranspose1d.__init__ (fan_out = C_in)
    scale = float(np.sqrt(1.0 / fan_in))
    U = jax.random.normal(k_u, (C_in, rank), jnp.float32) * scale
    V = jax.random.normal(k_v, (rank, fan_in), jnp.float32) * scale

    y = lora_conv_transpose1d(x, w_frozen, bias, U, V,
                              alpha=alpha, stride=stride, padding=padding,
                              output_padding=output_padding)
    y = jax.block_until_ready(y)

    y_ref = _reference_forward(x, w_frozen, bias, U, V,
                               alpha, stride, padding, output_padding)
    # bf16 operands / f32 accumulation -> loose-but-safe tolerance vs. the f64 reference.
    np.testing.assert_allclose(np.asarray(y, np.float64), y_ref, rtol=5e-2, atol=5e-2)

    print("KERNEL_OK")
</pallas_src>

<mosaic_0001>
module attributes {stable_mosaic.version = 11 : i64} {
  func.func @_lora_weight_kernel(%arg0: memref<8x32xf32, #tpu.memory_space<vmem>>, %arg1: memref<8x4xf32, #tpu.memory_space<vmem>>, %arg2: memref<4x32xf32, #tpu.memory_space<vmem>>, %arg3: memref<8x32xf32, #tpu.memory_space<vmem>>) attributes {dimension_semantics = [], scalar_prefetch = 0 : i64, scratch_operands = 0 : i64, tpu.core_type = #tpu.core_type<tc>} {
    %c0 = arith.constant 0 : index
    %c0_0 = arith.constant 0 : index
    %0 = vector.load %arg1[%c0, %c0_0] : memref<8x4xf32, #tpu.memory_space<vmem>>, vector<8x4xf32>
    %c0_1 = arith.constant 0 : index
    %c0_2 = arith.constant 0 : index
    %1 = vector.load %arg2[%c0_1, %c0_2] : memref<4x32xf32, #tpu.memory_space<vmem>>, vector<4x32xf32>
    %cst = arith.constant dense<0.000000e+00> : vector<8x32xf32>
    %2 = tpu.matmul %0, %1, %cst {dimension_numbers = #tpu.dot_dimension_numbers<[1], [0], [0], [1], [0, 0, 1, 1], [], []>} : vector<8x4xf32>, vector<4x32xf32>, vector<8x32xf32> -> vector<8x32xf32>
    %c0_3 = arith.constant 0 : index
    %c0_4 = arith.constant 0 : index
    %3 = vector.load %arg0[%c0_3, %c0_4] : memref<8x32xf32, #tpu.memory_space<vmem>>, vector<8x32xf32>
    %cst_5 = arith.constant 1.000000e+00 : f32
    %4 = vector.broadcast %cst_5 : f32 to vector<8x32xf32>
    %5 = arith.mulf %4, %2 : vector<8x32xf32>
    %6 = arith.addf %3, %5 : vector<8x32xf32>
    %c0_6 = arith.constant 0 : index
    %c0_7 = arith.constant 0 : index
    %7 = vector.load %arg3[%c0_6, %c0_7] : memref<8x32xf32, #tpu.memory_space<vmem>>, vector<8x32xf32>
    tpu.vector_store %arg3[%c0_6, %c0_7], %6 {strides = array<i32>} : memref<8x32xf32, #tpu.memory_space<vmem>>, vector<8x32xf32>,
    return
  }
}

</mosaic_0001>

<bundles_post_ra>
// kernel: tpu_custom_call.1
= control target key start
LH: loop header
LB: loop body
LE: loop exit
PB: predicated region body
PF: predicated region fallthrough
CT: control target
= control target key end

     0   :  { %vm21_vm0 = vcmask 1043456   ;;  %v149_v2 = vmov 0.0   ;;  %vm150_vm1 = vmmov 0   ;;  %vm17_vm2 = vcmask 31744   ;;  %s193_s0 = inlined_call_operand.vmem [shape: f32[8,32], index: 0, kind: input, shape index: {}]   ;;  %s194_s1 = inlined_call_operand.vmem [shape: f32[8,4], index: 1, kind: input, shape index: {}]   ;;  %s195_s2 = inlined_call_operand.vmem [shape: f32[4,32], index: 2, kind: input, shape index: {}]   ;;  %s196_s3 = inlined_call_operand.hbm [shape: f32[8,32], index: 3, kind: output, shape index: {}]  }
   0x1   :  { %v16_v0 = vld [vmem:[%s195_s2] sm:$0xf]  ;;  %117 = vmatprep.subr.mxu0 %v149_v2  ;;  %119 = vmatprep.mubr.msk.f32.mxu0 %vm150_vm1, %v149_v2 }
   0x2   :  { %v15_v1 = vld [vmem:[%s194_s1] sm:$0xff] }
   0x3   :  { %8 = vsyncpa [#allocation3], 0  ;;  %118 = vmatpush3.msk.msra.mxu0 %vm21_vm0, %v16_v0  ;;  %v95_v3 = vld [vmem:[%s193_s0] sm:$0xff]  ;;  %s151_s18 = smov [#allocation2]   ;;  %vm97_vm3 = vcmask 261120  }
   0x4   :  { %120 = vmatmul.mubr.msk.f32.vlgmr.msra.gmra.mrb[0].mxu0 %vm17_vm2, %v15_v1  ;;  %s105_s19 = sshll.u32 %s151_s18, 4  ;;  %s106_s19 = int_to_ptr.vmem [resolvable:$true] %s105_s19 }
   0x5   :  { %s125_s1 = scalar_lea.vmem %s106_s19, 128  ;;  %p130_p1 = scmp.lt.s32.totalorder %s106_s19, %s106_s19 }
   0x6   :  { %p126_p0 = scmp.ne.s32.totalorder %s106_s19, %s125_s1  ;;  %p131_p2 = scmp.lt.s32.totalorder %s125_s1, %s125_s1 }
   0x8   :  { %p132_p3 = por %p131_p2, %p130_p1 }
   0xa   :  { %p133_p4 = pnand %p132_p3, %p126_p0 }
  0xd7   :  { %v91_v4 = vpop.f32.mrb[0].mxu0 }
  0xd8   :  { %v96_v5 = vadd.f32 %v95_v3, %v91_v4  ;;  %v121_v6 = vpop.f32.mrb[1].mxu0 }
  0xda   :  { %98 = vst.msk [vmem:[#allocation2] sm:$0xff] %vm97_vm3, %v96_v5 }
  0xdb   :  { %136 = shalt.err (!%p133_p4)
}
  0xdc   :  { %s137_s21 = scalar_lea.hbm %s196_s3, 128 }
  0xdd   :  { %p138_p5 = scmp.ne.s32.totalorder %s196_s3, %s137_s21  ;;  %p141_p6 = scmp.lt.u32.totalorder %s137_s21, %s196_s3 }
  0xdf   :  { %p143_p7 = pnand %p141_p6, %p138_p5 }
  0xe1   :  { %146 = shalt.err (!%p143_p7)
}
  0xe2   :  { %108 = dma.vmem_to_hbm [thread:$0]  %s106_s19, 128, %s196_s3, [#allocation3]  }
  0xe3   :  { %147 = dma.done.wait [#allocation3], 128  }
  0xe4   :  { %148 = vsyncadd [#allocation3], 4294967168 }
  0xe5   :  { %112 = vsyncpa [#allocation3], 1 }

</bundles_post_ra>
